<compile_context>
chip_gen: v7x
topology: tpu7x:2x2x1
jax: 0.10.0
libtpu: 0.0.40
codegen_flags: <defaults>
</compile_context>

<pallas_src>
import math
import functools

import jax
import jax.numpy as jnp
from jax import lax
from jax.experimental import pallas as pl
from jax.experimental.pallas import tpu as pltpu


def _layernorm(z, w, b, eps=1e-5):
    mu = jnp.mean(z, axis=-1, keepdims=True)
    var = jnp.mean((z - mu) ** 2, axis=-1, keepdims=True)
    return (z - mu) * lax.rsqrt(var + eps) * w + b


def _gelu_exact(x):
    # PyTorch nn.GELU() default = exact erf formulation.
    return 0.5 * x * (1.0 + lax.erf(x * (1.0 / math.sqrt(2.0))))


def vit_block_kernel(x_ref,
                     ln1w_ref, ln1b_ref,
                     wqkv_ref, wo_ref,
                     ln2w_ref, ln2b_ref,
                     w1_ref, b1_ref, w2_ref, b2_ref,
                     out_ref,
                     *, num_heads):
    tb, n, d = x_ref.shape
    dk = d // num_heads
    cdt = wqkv_ref.dtype                      # matmul-operand dtype (bf16)

    # Fold TB images into the row dimension: every matmul presents TB*N rows to the MXU.
    x = x_ref[...].astype(jnp.float32).reshape(tb * n, d)

    # ---- LayerNorm 1 (f32 VPU math) ----
    ln1 = _layernorm(x, ln1w_ref[...], ln1b_ref[...])          # (TB*N, D)

    # ---- Fused QKV projection: one (TB*N, D) x (D, 3D) matmul ----
    qkv = jnp.dot(ln1.astype(cdt), wqkv_ref[...],
                  preferred_element_type=jnp.float32)          # (TB*N, 3D) f32
    scale = 1.0 / math.sqrt(dk)
    q = (qkv[:, :d] * scale).astype(cdt).reshape(tb, n, d)     # scale folded into q once
    k = qkv[:, d:2 * d].astype(cdt).reshape(tb, n, d)
    v = qkv[:, 2 * d:].astype(cdt).reshape(tb, n, d)

    wo = wo_ref[...]                                           # (D, D) bf16

    # ---- Per-head attention; accumulate directly through Wo (no concat, no k.T) ----
    attn_out = jnp.zeros((tb * n, d), jnp.float32)
    # Static unroll: num_heads is small here.
    # TODO(synk): for ViT-L/H head counts, switch to lax.fori_loop over an
    # (H, N, dk)-stacked layout to bound vreg live ranges.
    for h in range(num_heads):
        sl = slice(h * dk, (h + 1) * dk)
        qh, kh, vh = q[:, :, sl], k[:, :, sl], v[:, :, sl]     # (TB, N, dk)
        s = jnp.einsum("bqd,bkd->bqk", qh, kh,
                       preferred_element_type=jnp.float32)     # (TB, N, N)
        m = jnp.max(s, axis=-1, keepdims=True)
        e = jnp.exp(s - m)
        p = e * pl.reciprocal(jnp.sum(e, axis=-1, keepdims=True), approx=True)
        oh = jnp.einsum("bqk,bkd->bqd", p.astype(cdt), vh,
                        preferred_element_type=jnp.float32)    # (TB, N, dk)
        attn_out = attn_out + jnp.dot(
            oh.reshape(tb * n, dk).astype(cdt), wo[sl, :],
            preferred_element_type=jnp.float32)                # += o_h @ Wo[h-slice]

    x1 = attn_out + x                                          # residual 1

    # ---- LayerNorm 2 + MLP (dropout = identity, eval mode) ----
    ln2 = _layernorm(x1, ln2w_ref[...], ln2b_ref[...])
    h1 = jnp.dot(ln2.astype(cdt), w1_ref[...],
                 preferred_element_type=jnp.float32) + b1_ref[...]
    h1 = _gelu_exact(h1)
    mlp = jnp.dot(h1.astype(cdt), w2_ref[...],
                  preferred_element_type=jnp.float32) + b2_ref[...]

    y = mlp + x1                                               # residual 2
    out_ref[...] = y.reshape(tb, n, d).astype(out_ref.dtype)


def _pick_batch_tile(B, N, target_rows=512):
    """Largest divisor of B with roughly <= target_rows rows per grid step."""
    tb = max(1, min(B, max(1, target_rows // max(N, 1))))
    while B % tb:
        tb -= 1
    return tb


def vit_block(x, params, num_heads, *, compute_dtype=jnp.bfloat16):
    B, N, D = x.shape
    H = params["w1"].shape[1]                 # mlp hidden
    TB = _pick_batch_tile(B, N)

    # Fuse QKV weights and cast matmul weights to bf16 (f32 accumulation in-kernel).
    wqkv = jnp.concatenate([params["wq"], params["wk"], params["wv"]],
                           axis=1).astype(compute_dtype)       # (D, 3D)
    wo = params["wo"].astype(compute_dtype)
    w1 = params["w1"].astype(compute_dtype)
    w2 = params["w2"].astype(compute_dtype)

    def full(shape):
        return pl.BlockSpec(shape, lambda b, _s=len(shape): (0,) * _s)

    in_specs = [
        pl.BlockSpec((TB, N, D), lambda b: (b, 0, 0)),   # x
        full((1, D)), full((1, D)),                      # ln1 w, b   (f32)
        full((D, 3 * D)), full((D, D)),                  # Wqkv, Wo   (bf16)
        full((1, D)), full((1, D)),                      # ln2 w, b   (f32)
        full((D, H)), full((1, H)),                      # dense1 W (bf16), b (f32)
        full((H, D)), full((1, D)),                      # dense2 W (bf16), b (f32)
    ]
    out_spec = pl.BlockSpec((TB, N, D), lambda b: (b, 0, 0))

    dk = D // num_heads
    flops = int(2 * B * N * D * (3 * D + D + 2 * H)        # projections + MLP
                + 4 * B * num_heads * N * N * dk)          # scores + p@v
    transcendentals = int(B * num_heads * N * N + B * N * H)
    bytes_accessed = int(2 * x.size * x.dtype.itemsize
                         + (wqkv.size + wo.size + w1.size + w2.size) * 2
                         + (4 * D + H) * 4)

    kernel = functools.partial(vit_block_kernel, num_heads=num_heads)
    return pl.pallas_call(
        kernel,
        out_shape=jax.ShapeDtypeStruct((B, N, D), x.dtype),
        grid=(B // TB,),
        in_specs=in_specs,
        out_specs=out_spec,
        compiler_params=pltpu.CompilerParams(
            dimension_semantics=("parallel",),
            vmem_limit_bytes=48 * 1024 * 1024),
        cost_estimate=pl.CostEstimate(
            flops=flops,
            transcendentals=transcendentals,
            bytes_accessed=bytes_accessed),
    )(x,
      params["ln1_w"], params["ln1_b"],
      wqkv, wo,
      params["ln2_w"], params["ln2_b"],
      w1, params["b1"], w2, params["b2"])


def vit_block_ref(x, params, num_heads):
    """Pure-JAX reference replicating the PyTorch forward (eval-mode dropout)."""
    B, N, D = x.shape
    dk = D // num_heads

    def ln(z, w, b):
        mu = z.mean(-1, keepdims=True)
        var = ((z - mu) ** 2).mean(-1, keepdims=True)
        return (z - mu) / jnp.sqrt(var + 1e-5) * w + b

    ln1 = ln(x, params["ln1_w"][0], params["ln1_b"][0])
    q = ln1 @ params["wq"]
    k = ln1 @ params["wk"]
    v = ln1 @ params["wv"]

    def split(t):  # (B, N, D) -> (B, h, N, dk)
        return t.reshape(B, N, num_heads, dk).transpose(0, 2, 1, 3)

    qh, kh, vh = split(q), split(k), split(v)
    scores = jnp.einsum("bhqd,bhkd->bhqk", qh, kh) / math.sqrt(dk)
    p = jax.nn.softmax(scores, axis=-1)
    o = jnp.einsum("bhqk,bhkd->bhqd", p, vh)
    o = o.transpose(0, 2, 1, 3).reshape(B, N, D)
    x1 = o @ params["wo"] + x

    ln2 = ln(x1, params["ln2_w"][0], params["ln2_b"][0])
    h1 = jax.nn.gelu(ln2 @ params["w1"] + params["b1"][0], approximate=False)
    out = h1 @ params["w2"] + params["b2"][0]
    return out + x1


if __name__ == "__main__":
    # Small shapes consistent with the module's forward: x is (B, N, num_hiddens).
    # Full-array blocks make the unaligned D=32 lane dim legal; real ViT (D=768) is
    # 128-aligned.
    B, N, D = 2, 8, 32
    NUM_HEADS = 4
    MLP_HIDDEN = 64

    key = jax.random.PRNGKey(0)
    ks = jax.random.split(key, 12)

    x = jax.random.normal(ks[0], (B, N, D), dtype=jnp.float32)

    s = 0.1
    params = {
        # LayerNorm params (stored as (1, D) for 2-D VMEM friendliness)
        "ln1_w": 1.0 + s * jax.random.normal(ks[1], (1, D), jnp.float32),
        "ln1_b": s * jax.random.normal(ks[2], (1, D), jnp.float32),
        "ln2_w": 1.0 + s * jax.random.normal(ks[3], (1, D), jnp.float32),
        "ln2_b": s * jax.random.normal(ks[4], (1, D), jnp.float32),
        # Attention projections, stored (in, out); no bias (use_bias=False)
        "wq": s * jax.random.normal(ks[5], (D, D), jnp.float32),
        "wk": s * jax.random.normal(ks[6], (D, D), jnp.float32),
        "wv": s * jax.random.normal(ks[7], (D, D), jnp.float32),
        "wo": s * jax.random.normal(ks[8], (D, D), jnp.float32),
        # MLP: dense1 (D -> MLP_HIDDEN) with bias, dense2 (MLP_HIDDEN -> D) with bias
        "w1": s * jax.random.normal(ks[9], (D, MLP_HIDDEN), jnp.float32),
        "b1": s * jax.random.normal(ks[10], (1, MLP_HIDDEN), jnp.float32),
        "w2": s * jax.random.normal(ks[11], (MLP_HIDDEN, D), jnp.float32),
        "b2": jnp.zeros((1, D), jnp.float32),
    }

    out = jax.block_until_ready(vit_block(x, params, NUM_HEADS))

    # Reference uses the same bf16-rounded matmul weights (upcast to f32) so the
    # comparison isolates kernel math from the intentional weight quantization.
    ref_params = dict(params)
    for name in ("wq", "wk", "wv", "wo", "w1", "w2"):
        ref_params[name] = params[name].astype(jnp.bfloat16).astype(jnp.float32)
    ref = jax.block_until_ready(vit_block_ref(x, ref_params, NUM_HEADS))

    assert out.shape == (B, N, D)
    max_err = float(jnp.max(jnp.abs(out - ref)))
    assert jnp.allclose(out, ref, atol=2e-2, rtol=2e-2), (
        f"mismatch vs pure-JAX reference (max abs err {max_err})")

    print("KERNEL_OK")
</pallas_src>

<mosaic_0001>
module attributes {stable_mosaic.version = 11 : i64} {
  func.func @vit_block_kernel(%arg0: i32, %arg1: memref<2x8x32xf32, #tpu.memory_space<vmem>>, %arg2: memref<1x32xf32, #tpu.memory_space<vmem>>, %arg3: memref<1x32xf32, #tpu.memory_space<vmem>>, %arg4: memref<32x96xbf16, #tpu.memory_space<vmem>>, %arg5: memref<32x32xbf16, #tpu.memory_space<vmem>>, %arg6: memref<1x32xf32, #tpu.memory_space<vmem>>, %arg7: memref<1x32xf32, #tpu.memory_space<vmem>>, %arg8: memref<32x64xbf16, #tpu.memory_space<vmem>>, %arg9: memref<1x64xf32, #tpu.memory_space<vmem>>, %arg10: memref<64x32xbf16, #tpu.memory_space<vmem>>, %arg11: memref<1x32xf32, #tpu.memory_space<vmem>>, %arg12: memref<2x8x32xf32, #tpu.memory_space<vmem>>) attributes {dimension_semantics = [#tpu.dimension_semantics<parallel>], iteration_bounds = array<i64: 1>, scalar_prefetch = 0 : i64, scratch_operands = 0 : i64, tpu.core_type = #tpu.core_type<tc>, window_params = [{transform_indices = @transform_0, window_bounds = array<i64: 2, 8, 32>}, {pipeline_mode = #tpu.pipeline_mode<synchronous>, transform_indices = @transform_1, window_bounds = array<i64: 1, 32>}, {pipeline_mode = #tpu.pipeline_mode<synchronous>, transform_indices = @transform_2, window_bounds = array<i64: 1, 32>}, {pipeline_mode = #tpu.pipeline_mode<synchronous>, transform_indices = @transform_3, window_bounds = array<i64: 32, 96>}, {pipeline_mode = #tpu.pipeline_mode<synchronous>, transform_indices = @transform_4, window_bounds = array<i64: 32, 32>}, {pipeline_mode = #tpu.pipeline_mode<synchronous>, transform_indices = @transform_5, window_bounds = array<i64: 1, 32>}, {pipeline_mode = #tpu.pipeline_mode<synchronous>, transform_indices = @transform_6, window_bounds = array<i64: 1, 32>}, {pipeline_mode = #tpu.pipeline_mode<synchronous>, transform_indices = @transform_7, window_bounds = array<i64: 32, 64>}, {pipeline_mode = #tpu.pipeline_mode<synchronous>, transform_indices = @transform_8, window_bounds = array<i64: 1, 64>}, {pipeline_mode = #tpu.pipeline_mode<synchronous>, transform_indices = @transform_9, window_bounds = array<i64: 64, 32>}, {pipeline_mode = #tpu.pipeline_mode<synchronous>, transform_indices = @transform_10, window_bounds = array<i64: 1, 32>}, {transform_indices = @transform_11, window_bounds = array<i64: 2, 8, 32>}]} {
    %c0 = arith.constant 0 : index
    %c0_0 = arith.constant 0 : index
    %c0_1 = arith.constant 0 : index
    %0 = vector.load %arg1[%c0, %c0_0, %c0_1] : memref<2x8x32xf32, #tpu.memory_space<vmem>>, vector<2x8x32xf32>
    %1 = vector.shape_cast %0 : vector<2x8x32xf32> to vector<16x32xf32>
    %c0_2 = arith.constant 0 : index
    %c0_3 = arith.constant 0 : index
    %2 = vector.load %arg2[%c0_2, %c0_3] : memref<1x32xf32, #tpu.memory_space<vmem>>, vector<1x32xf32>
    %c0_4 = arith.constant 0 : index
    %c0_5 = arith.constant 0 : index
    %3 = vector.load %arg3[%c0_4, %c0_5] : memref<1x32xf32, #tpu.memory_space<vmem>>, vector<1x32xf32>
    %cst = arith.constant dense<0.000000e+00> : vector<16xf32>
    %4 = vector.multi_reduction <add>, %1, %cst [1] : vector<16x32xf32> to vector<16xf32>
    %5 = vector.shape_cast %4 : vector<16xf32> to vector<16x1xf32>
    %cst_6 = arith.constant 3.200000e+01 : f32
    %6 = vector.broadcast %cst_6 : f32 to vector<16x1xf32>
    %7 = arith.divf %5, %6 : vector<16x1xf32>
    %8 = vector.broadcast %7 : vector<16x1xf32> to vector<16x32xf32>
    %9 = arith.subf %1, %8 : vector<16x32xf32>
    %10 = arith.mulf %9, %9 : vector<16x32xf32>
    %cst_7 = arith.constant dense<0.000000e+00> : vector<16xf32>
    %11 = vector.multi_reduction <add>, %10, %cst_7 [1] : vector<16x32xf32> to vector<16xf32>
    %12 = vector.shape_cast %11 : vector<16xf32> to vector<16x1xf32>
    %cst_8 = arith.constant 3.200000e+01 : f32
    %13 = vector.broadcast %cst_8 : f32 to vector<16x1xf32>
    %14 = arith.divf %12, %13 : vector<16x1xf32>
    %15 = vector.broadcast %7 : vector<16x1xf32> to vector<16x32xf32>
    %16 = arith.subf %1, %15 : vector<16x32xf32>
    %cst_9 = arith.constant 9.99999974E-6 : f32
    %17 = vector.broadcast %cst_9 : f32 to vector<16x1xf32>
    %18 = arith.addf %14, %17 : vector<16x1xf32>
    %19 = math.rsqrt %18 : vector<16x1xf32>
    %20 = vector.broadcast %19 : vector<16x1xf32> to vector<16x32xf32>
    %21 = arith.mulf %16, %20 : vector<16x32xf32>
    %22 = vector.broadcast %2 : vector<1x32xf32> to vector<16x32xf32>
    %23 = arith.mulf %21, %22 : vector<16x32xf32>
    %24 = vector.broadcast %3 : vector<1x32xf32> to vector<16x32xf32>
    %25 = arith.addf %23, %24 : vector<16x32xf32>
    %26 = arith.truncf %25 : vector<16x32xf32> to vector<16x32xbf16>
    %c0_10 = arith.constant 0 : index
    %c0_11 = arith.constant 0 : index
    %27 = vector.load %arg4[%c0_10, %c0_11] : memref<32x96xbf16, #tpu.memory_space<vmem>>, vector<32x96xbf16>
    %cst_12 = arith.constant dense<0.000000e+00> : vector<16x96xf32>
    %28 = tpu.matmul %26, %27, %cst_12 {dimension_numbers = #tpu.dot_dimension_numbers<[1], [0], [0], [1], [0, 0, 1, 1], [], []>} : vector<16x32xbf16>, vector<32x96xbf16>, vector<16x96xf32> -> vector<16x96xf32>
    %29 = vector.extract_strided_slice %28 {offsets = [0, 0], sizes = [16, 32], strides = [1, 1]} : vector<16x96xf32> to vector<16x32xf32>
    %cst_13 = arith.constant 0.353553385 : f32
    %30 = vector.broadcast %cst_13 : f32 to vector<16x32xf32>
    %31 = arith.mulf %29, %30 : vector<16x32xf32>
    %32 = arith.truncf %31 : vector<16x32xf32> to vector<16x32xbf16>
    %33 = vector.shape_cast %32 : vector<16x32xbf16> to vector<2x8x32xbf16>
    %34 = vector.extract_strided_slice %28 {offsets = [0, 32], sizes = [16, 32], strides = [1, 1]} : vector<16x96xf32> to vector<16x32xf32>
    %35 = arith.truncf %34 : vector<16x32xf32> to vector<16x32xbf16>
    %36 = vector.shape_cast %35 : vector<16x32xbf16> to vector<2x8x32xbf16>
    %37 = vector.extract_strided_slice %28 {offsets = [0, 64], sizes = [16, 32], strides = [1, 1]} : vector<16x96xf32> to vector<16x32xf32>
    %38 = arith.truncf %37 : vector<16x32xf32> to vector<16x32xbf16>
    %39 = vector.shape_cast %38 : vector<16x32xbf16> to vector<2x8x32xbf16>
    %c0_14 = arith.constant 0 : index
    %c0_15 = arith.constant 0 : index
    %40 = vector.load %arg5[%c0_14, %c0_15] : memref<32x32xbf16, #tpu.memory_space<vmem>>, vector<32x32xbf16>
    %cst_16 = arith.constant 0.000000e+00 : f32
    %41 = vector.broadcast %cst_16 : f32 to vector<16x32xf32>
    %42 = vector.extract_strided_slice %33 {offsets = [0, 0, 0], sizes = [2, 8, 8], strides = [1, 1, 1]} : vector<2x8x32xbf16> to vector<2x8x8xbf16>
    %43 = vector.extract_strided_slice %36 {offsets = [0, 0, 0], sizes = [2, 8, 8], strides = [1, 1, 1]} : vector<2x8x32xbf16> to vector<2x8x8xbf16>
    %44 = vector.extract_strided_slice %39 {offsets = [0, 0, 0], sizes = [2, 8, 8], strides = [1, 1, 1]} : vector<2x8x32xbf16> to vector<2x8x8xbf16>
    "tpu.trace_start"() <{level = 10 : i32, message = "bqd,bkd->bqk"}> : () -> ()
    %cst_17 = arith.constant dense<0.000000e+00> : vector<2x8x8xf32>
    %45 = tpu.matmul %42, %43, %cst_17 {dimension_numbers = #tpu.dot_dimension_numbers<[2], [2], [1], [1], [0, 0, 0, 1, 1, 1], [0], [0]>} : vector<2x8x8xbf16>, vector<2x8x8xbf16>, vector<2x8x8xf32> -> vector<2x8x8xf32>
    "tpu.trace_stop"() : () -> ()
    %cst_18 = arith.constant dense<0xFF800000> : vector<2x8xf32>
    %46 = vector.multi_reduction <maximumf>, %45, %cst_18 [2] : vector<2x8x8xf32> to vector<2x8xf32>
    %47 = vector.shape_cast %46 : vector<2x8xf32> to vector<2x8x1xf32>
    %48 = vector.broadcast %47 : vector<2x8x1xf32> to vector<2x8x8xf32>
    %49 = arith.subf %45, %48 : vector<2x8x8xf32>
    %50 = math.exp %49 : vector<2x8x8xf32>
    %cst_19 = arith.constant dense<0.000000e+00> : vector<2x8xf32>
    %51 = vector.multi_reduction <add>, %50, %cst_19 [2] : vector<2x8x8xf32> to vector<2x8xf32>
    %52 = vector.shape_cast %51 : vector<2x8xf32> to vector<2x8x1xf32>
    %53 = tpu.reciprocal %52 {approx = true} : vector<2x8x1xf32> -> vector<2x8x1xf32>
    %54 = vector.broadcast %53 : vector<2x8x1xf32> to vector<2x8x8xf32>
    %55 = arith.mulf %50, %54 : vector<2x8x8xf32>
    %56 = arith.truncf %55 : vector<2x8x8xf32> to vector<2x8x8xbf16>
    "tpu.trace_start"() <{level = 10 : i32, message = "bqk,bkd->bqd"}> : () -> ()
    %cst_20 = arith.constant dense<0.000000e+00> : vector<2x8x8xf32>
    %57 = tpu.matmul %56, %44, %cst_20 {dimension_numbers = #tpu.dot_dimension_numbers<[2], [1], [1], [2], [0, 0, 0, 1, 1, 2], [0], [0]>} : vector<2x8x8xbf16>, vector<2x8x8xbf16>, vector<2x8x8xf32> -> vector<2x8x8xf32>
    "tpu.trace_stop"() : () -> ()
    %58 = vector.shape_cast %57 : vector<2x8x8xf32> to vector<16x8xf32>
    %59 = arith.truncf %58 : vector<16x8xf32> to vector<16x8xbf16>
    %60 = vector.extract_strided_slice %40 {offsets = [0, 0], sizes = [8, 32], strides = [1, 1]} : vector<32x32xbf16> to vector<8x32xbf16>
    %cst_21 = arith.constant dense<0.000000e+00> : vector<16x32xf32>
    %61 = tpu.matmul %59, %60, %cst_21 {dimension_numbers = #tpu.dot_dimension_numbers<[1], [0], [0], [1], [0, 0, 1, 1], [], []>} : vector<16x8xbf16>, vector<8x32xbf16>, vector<16x32xf32> -> vector<16x32xf32>
    %62 = arith.addf %41, %61 : vector<16x32xf32>
    %63 = vector.extract_strided_slice %33 {offsets = [0, 0, 8], sizes = [2, 8, 8], strides = [1, 1, 1]} : vector<2x8x32xbf16> to vector<2x8x8xbf16>
    %64 = vector.extract_strided_slice %36 {offsets = [0, 0, 8], sizes = [2, 8, 8], strides = [1, 1, 1]} : vector<2x8x32xbf16> to vector<2x8x8xbf16>
    %65 = vector.extract_strided_slice %39 {offsets = [0, 0, 8], sizes = [2, 8, 8], strides = [1, 1, 1]} : vector<2x8x32xbf16> to vector<2x8x8xbf16>
    "tpu.trace_start"() <{level = 10 : i32, message = "bqd,bkd->bqk"}> : () -> ()
    %cst_22 = arith.constant dense<0.000000e+00> : vector<2x8x8xf32>
    %66 = tpu.matmul %63, %64, %cst_22 {dimension_numbers = #tpu.dot_dimension_numbers<[2], [2], [1], [1], [0, 0, 0, 1, 1, 1], [0], [0]>} : vector<2x8x8xbf16>, vector<2x8x8xbf16>, vector<2x8x8xf32> -> vector<2x8x8xf32>
    "tpu.trace_stop"() : () -> ()
    %cst_23 = arith.constant dense<0xFF800000> : vector<2x8xf32>
    %67 = vector.multi_reduction <maximumf>, %66, %cst_23 [2] : vector<2x8x8xf32> to vector<2x8xf32>
    %68 = vector.shape_cast %67 : vector<2x8xf32> to vector<2x8x1xf32>
    %69 = vector.broadcast %68 : vector<2x8x1xf32> to vector<2x8x8xf32>
    %70 = arith.subf %66, %69 : vector<2x8x8xf32>
    %71 = math.exp %70 : vector<2x8x8xf32>
    %cst_24 = arith.constant dense<0.000000e+00> : vector<2x8xf32>
    %72 = vector.multi_reduction <add>, %71, %cst_24 [2] : vector<2x8x8xf32> to vector<2x8xf32>
    %73 = vector.shape_cast %72 : vector<2x8xf32> to vector<2x8x1xf32>
    %74 = tpu.reciprocal %73 {approx = true} : vector<2x8x1xf32> -> vector<2x8x1xf32>
    %75 = vector.broadcast %74 : vector<2x8x1xf32> to vector<2x8x8xf32>
    %76 = arith.mulf %71, %75 : vector<2x8x8xf32>
    %77 = arith.truncf %76 : vector<2x8x8xf32> to vector<2x8x8xbf16>
    "tpu.trace_start"() <{level = 10 : i32, message = "bqk,bkd->bqd"}> : () -> ()
    %cst_25 = arith.constant dense<0.000000e+00> : vector<2x8x8xf32>
    %78 = tpu.matmul %77, %65, %cst_25 {dimension_numbers = #tpu.dot_dimension_numbers<[2], [1], [1], [2], [0, 0, 0, 1, 1, 2], [0], [0]>} : vector<2x8x8xbf16>, vector<2x8x8xbf16>, vector<2x8x8xf32> -> vector<2x8x8xf32>
    "tpu.trace_stop"() : () -> ()
    %79 = vector.shape_cast %78 : vector<2x8x8xf32> to vector<16x8xf32>
    %80 = arith.truncf %79 : vector<16x8xf32> to vector<16x8xbf16>
    %81 = vector.extract_strided_slice %40 {offsets = [8, 0], sizes = [8, 32], strides = [1, 1]} : vector<32x32xbf16> to vector<8x32xbf16>
    %cst_26 = arith.constant dense<0.000000e+00> : vector<16x32xf32>
    %82 = tpu.matmul %80, %81, %cst_26 {dimension_numbers = #tpu.dot_dimension_numbers<[1], [0], [0], [1], [0, 0, 1, 1], [], []>} : vector<16x8xbf16>, vector<8x32xbf16>, vector<16x32xf32> -> vector<16x32xf32>
    %83 = arith.addf %62, %82 : vector<16x32xf32>
    %84 = vector.extract_strided_slice %33 {offsets = [0, 0, 16], sizes = [2, 8, 8], strides = [1, 1, 1]} : vector<2x8x32xbf16> to vector<2x8x8xbf16>
    %85 = vector.extract_strided_slice %36 {offsets = [0, 0, 16], sizes = [2, 8, 8], strides = [1, 1, 1]} : vector<2x8x32xbf16> to vector<2x8x8xbf16>
    %86 = vector.extract_strided_slice %39 {offsets = [0, 0, 16], sizes = [2, 8, 8], strides = [1, 1, 1]} : vector<2x8x32xbf16> to vector<2x8x8xbf16>
    "tpu.trace_start"() <{level = 10 : i32, message = "bqd,bkd->bqk"}> : () -> ()
    %cst_27 = arith.constant dense<0.000000e+00> : vector<2x8x8xf32>
    %87 = tpu.matmul %84, %85, %cst_27 {dimension_numbers = #tpu.dot_dimension_numbers<[2], [2], [1], [1], [0, 0, 0, 1, 1, 1], [0], [0]>} : vector<2x8x8xbf16>, vector<2x8x8xbf16>, vector<2x8x8xf32> -> vector<2x8x8xf32>
    "tpu.trace_stop"() : () -> ()
    %cst_28 = arith.constant dense<0xFF800000> : vector<2x8xf32>
    %88 = vector.multi_reduction <maximumf>, %87, %cst_28 [2] : vector<2x8x8xf32> to vector<2x8xf32>
    %89 = vector.shape_cast %88 : vector<2x8xf32> to vector<2x8x1xf32>
    %90 = vector.broadcast %89 : vector<2x8x1xf32> to vector<2x8x8xf32>
    %91 = arith.subf %87, %90 : vector<2x8x8xf32>
    %92 = math.exp %91 : vector<2x8x8xf32>
    %cst_29 = arith.constant dense<0.000000e+00> : vector<2x8xf32>
    %93 = vector.multi_reduction <add>, %92, %cst_29 [2] : vector<2x8x8xf32> to vector<2x8xf32>
    %94 = vector.shape_cast %93 : vector<2x8xf32> to vector<2x8x1xf32>
    %95 = tpu.reciprocal %94 {approx = true} : vector<2x8x1xf32> -> vector<2x8x1xf32>
    %96 = vector.broadcast %95 : vector<2x8x1xf32> to vector<2x8x8xf32>
    %97 = arith.mulf %92, %96 : vector<2x8x8xf32>
    %98 = arith.truncf %97 : vector<2x8x8xf32> to vector<2x8x8xbf16>
    "tpu.trace_start"() <{level = 10 : i32, message = "bqk,bkd->bqd"}> : () -> ()
    %cst_30 = arith.constant dense<0.000000e+00> : vector<2x8x8xf32>
    %99 = tpu.matmul %98, %86, %cst_30 {dimension_numbers = #tpu.dot_dimension_numbers<[2], [1], [1], [2], [0, 0, 0, 1, 1, 2], [0], [0]>} : vector<2x8x8xbf16>, vector<2x8x8xbf16>, vector<2x8x8xf32> -> vector<2x8x8xf32>
    "tpu.trace_stop"() : () -> ()
    %100 = vector.shape_cast %99 : vector<2x8x8xf32> to vector<16x8xf32>
    %101 = arith.truncf %100 : vector<16x8xf32> to vector<16x8xbf16>
    %102 = vector.extract_strided_slice %40 {offsets = [16, 0], sizes = [8, 32], strides = [1, 1]} : vector<32x32xbf16> to vector<8x32xbf16>
    %cst_31 = arith.constant dense<0.000000e+00> : vector<16x32xf32>
    %103 = tpu.matmul %101, %102, %cst_31 {dimension_numbers = #tpu.dot_dimension_numbers<[1], [0], [0], [1], [0, 0, 1, 1], [], []>} : vector<16x8xbf16>, vector<8x32xbf16>, vector<16x32xf32> -> vector<16x32xf32>
    %104 = arith.addf %83, %103 : vector<16x32xf32>
    %105 = vector.extract_strided_slice %33 {offsets = [0, 0, 24], sizes = [2, 8, 8], strides = [1, 1, 1]} : vector<2x8x32xbf16> to vector<2x8x8xbf16>
    %106 = vector.extract_strided_slice %36 {offsets = [0, 0, 24], sizes = [2, 8, 8], strides = [1, 1, 1]} : vector<2x8x32xbf16> to vector<2x8x8xbf16>
    %107 = vector.extract_strided_slice %39 {offsets = [0, 0, 24], sizes = [2, 8, 8], strides = [1, 1, 1]} : vector<2x8x32xbf16> to vector<2x8x8xbf16>
    "tpu.trace_start"() <{level = 10 : i32, message = "bqd,bkd->bqk"}> : () -> ()
    %cst_32 = arith.constant dense<0.000000e+00> : vector<2x8x8xf32>
    %108 = tpu.matmul %105, %106, %cst_32 {dimension_numbers = #tpu.dot_dimension_numbers<[2], [2], [1], [1], [0, 0, 0, 1, 1, 1], [0], [0]>} : vector<2x8x8xbf16>, vector<2x8x8xbf16>, vector<2x8x8xf32> -> vector<2x8x8xf32>
    "tpu.trace_stop"() : () -> ()
    %cst_33 = arith.constant dense<0xFF800000> : vector<2x8xf32>
    %109 = vector.multi_reduction <maximumf>, %108, %cst_33 [2] : vector<2x8x8xf32> to vector<2x8xf32>
    %110 = vector.shape_cast %109 : vector<2x8xf32> to vector<2x8x1xf32>
    %111 = vector.broadcast %110 : vector<2x8x1xf32> to vector<2x8x8xf32>
    %112 = arith.subf %108, %111 : vector<2x8x8xf32>
    %113 = math.exp %112 : vector<2x8x8xf32>
    %cst_34 = arith.constant dense<0.000000e+00> : vector<2x8xf32>
    %114 = vector.multi_reduction <add>, %113, %cst_34 [2] : vector<2x8x8xf32> to vector<2x8xf32>
    %115 = vector.shape_cast %114 : vector<2x8xf32> to vector<2x8x1xf32>
    %116 = tpu.reciprocal %115 {approx = true} : vector<2x8x1xf32> -> vector<2x8x1xf32>
    %117 = vector.broadcast %116 : vector<2x8x1xf32> to vector<2x8x8xf32>
    %118 = arith.mulf %113, %117 : vector<2x8x8xf32>
    %119 = arith.truncf %118 : vector<2x8x8xf32> to vector<2x8x8xbf16>
    "tpu.trace_start"() <{level = 10 : i32, message = "bqk,bkd->bqd"}> : () -> ()
    %cst_35 = arith.constant dense<0.000000e+00> : vector<2x8x8xf32>
    %120 = tpu.matmul %119, %107, %cst_35 {dimension_numbers = #tpu.dot_dimension_numbers<[2], [1], [1], [2], [0, 0, 0, 1, 1, 2], [0], [0]>} : vector<2x8x8xbf16>, vector<2x8x8xbf16>, vector<2x8x8xf32> -> vector<2x8x8xf32>
    "tpu.trace_stop"() : () -> ()
    %121 = vector.shape_cast %120 : vector<2x8x8xf32> to vector<16x8xf32>
    %122 = arith.truncf %121 : vector<16x8xf32> to vector<16x8xbf16>
    %123 = vector.extract_strided_slice %40 {offsets = [24, 0], sizes = [8, 32], strides = [1, 1]} : vector<32x32xbf16> to vector<8x32xbf16>
    %cst_36 = arith.constant dense<0.000000e+00> : vector<16x32xf32>
    %124 = tpu.matmul %122, %123, %cst_36 {dimension_numbers = #tpu.dot_dimension_numbers<[1], [0], [0], [1], [0, 0, 1, 1], [], []>} : vector<16x8xbf16>, vector<8x32xbf16>, vector<16x32xf32> -> vector<16x32xf32>
    %125 = arith.addf %104, %124 : vector<16x32xf32>
    %126 = arith.addf %125, %1 : vector<16x32xf32>
    %c0_37 = arith.constant 0 : index
    %c0_38 = arith.constant 0 : index
    %127 = vector.load %arg6[%c0_37, %c0_38] : memref<1x32xf32, #tpu.memory_space<vmem>>, vector<1x32xf32>
    %c0_39 = arith.constant 0 : index
    %c0_40 = arith.constant 0 : index
    %128 = vector.load %arg7[%c0_39, %c0_40] : memref<1x32xf32, #tpu.memory_space<vmem>>, vector<1x32xf32>
    %cst_41 = arith.constant dense<0.000000e+00> : vector<16xf32>
    %129 = vector.multi_reduction <add>, %126, %cst_41 [1] : vector<16x32xf32> to vector<16xf32>
    %130 = vector.shape_cast %129 : vector<16xf32> to vector<16x1xf32>
    %cst_42 = arith.constant 3.200000e+01 : f32
    %131 = vector.broadcast %cst_42 : f32 to vector<16x1xf32>
    %132 = arith.divf %130, %131 : vector<16x1xf32>
    %133 = vector.broadcast %132 : vector<16x1xf32> to vector<16x32xf32>
    %134 = arith.subf %126, %133 : vector<16x32xf32>
    %135 = arith.mulf %134, %134 : vector<16x32xf32>
    %cst_43 = arith.constant dense<0.000000e+00> : vector<16xf32>
    %136 = vector.multi_reduction <add>, %135, %cst_43 [1] : vector<16x32xf32> to vector<16xf32>
    %137 = vector.shape_cast %136 : vector<16xf32> to vector<16x1xf32>
    %cst_44 = arith.constant 3.200000e+01 : f32
    %138 = vector.broadcast %cst_44 : f32 to vector<16x1xf32>
    %139 = arith.divf %137, %138 : vector<16x1xf32>
    %140 = vector.broadcast %132 : vector<16x1xf32> to vector<16x32xf32>
    %141 = arith.subf %126, %140 : vector<16x32xf32>
    %cst_45 = arith.constant 9.99999974E-6 : f32
    %142 = vector.broadcast %cst_45 : f32 to vector<16x1xf32>
    %143 = arith.addf %139, %142 : vector<16x1xf32>
    %144 = math.rsqrt %143 : vector<16x1xf32>
    %145 = vector.broadcast %144 : vector<16x1xf32> to vector<16x32xf32>
    %146 = arith.mulf %141, %145 : vector<16x32xf32>
    %147 = vector.broadcast %127 : vector<1x32xf32> to vector<16x32xf32>
    %148 = arith.mulf %146, %147 : vector<16x32xf32>
    %149 = vector.broadcast %128 : vector<1x32xf32> to vector<16x32xf32>
    %150 = arith.addf %148, %149 : vector<16x32xf32>
    %151 = arith.truncf %150 : vector<16x32xf32> to vector<16x32xbf16>
    %c0_46 = arith.constant 0 : index
    %c0_47 = arith.constant 0 : index
    %152 = vector.load %arg8[%c0_46, %c0_47] : memref<32x64xbf16, #tpu.memory_space<vmem>>, vector<32x64xbf16>
    %cst_48 = arith.constant dense<0.000000e+00> : vector<16x64xf32>
    %153 = tpu.matmul %151, %152, %cst_48 {dimension_numbers = #tpu.dot_dimension_numbers<[1], [0], [0], [1], [0, 0, 1, 1], [], []>} : vector<16x32xbf16>, vector<32x64xbf16>, vector<16x64xf32> -> vector<16x64xf32>
    %c0_49 = arith.constant 0 : index
    %c0_50 = arith.constant 0 : index
    %154 = vector.load %arg9[%c0_49, %c0_50] : memref<1x64xf32, #tpu.memory_space<vmem>>, vector<1x64xf32>
    %155 = vector.broadcast %154 : vector<1x64xf32> to vector<16x64xf32>
    %156 = arith.addf %153, %155 : vector<16x64xf32>
    %cst_51 = arith.constant 5.000000e-01 : f32
    %157 = vector.broadcast %cst_51 : f32 to vector<16x64xf32>
    %158 = arith.mulf %157, %156 : vector<16x64xf32>
    %cst_52 = arith.constant 0.707106769 : f32
    %159 = vector.broadcast %cst_52 : f32 to vector<16x64xf32>
    %160 = arith.mulf %156, %159 : vector<16x64xf32>
    %161 = math.erf %160 : vector<16x64xf32>
    %cst_53 = arith.constant 1.000000e+00 : f32
    %162 = vector.broadcast %cst_53 : f32 to vector<16x64xf32>
    %163 = arith.addf %162, %161 : vector<16x64xf32>
    %164 = arith.mulf %158, %163 : vector<16x64xf32>
    %165 = arith.truncf %164 : vector<16x64xf32> to vector<16x64xbf16>
    %c0_54 = arith.constant 0 : index
    %c0_55 = arith.constant 0 : index
    %166 = vector.load %arg10[%c0_54, %c0_55] : memref<64x32xbf16, #tpu.memory_space<vmem>>, vector<64x32xbf16>
    %cst_56 = arith.constant dense<0.000000e+00> : vector<16x32xf32>
    %167 = tpu.matmul %165, %166, %cst_56 {dimension_numbers = #tpu.dot_dimension_numbers<[1], [0], [0], [1], [0, 0, 1, 1], [], []>} : vector<16x64xbf16>, vector<64x32xbf16>, vector<16x32xf32> -> vector<16x32xf32>
    %c0_57 = arith.constant 0 : index
    %c0_58 = arith.constant 0 : index
    %168 = vector.load %arg11[%c0_57, %c0_58] : memref<1x32xf32, #tpu.memory_space<vmem>>, vector<1x32xf32>
    %169 = vector.broadcast %168 : vector<1x32xf32> to vector<16x32xf32>
    %170 = arith.addf %167, %169 : vector<16x32xf32>
    %171 = arith.addf %170, %126 : vector<16x32xf32>
    %172 = vector.shape_cast %171 : vector<16x32xf32> to vector<2x8x32xf32>
    %c0_59 = arith.constant 0 : index
    %c0_60 = arith.constant 0 : index
    %c0_61 = arith.constant 0 : index
    %173 = vector.load %arg12[%c0_59, %c0_60, %c0_61] : memref<2x8x32xf32, #tpu.memory_space<vmem>>, vector<2x8x32xf32>
    tpu.vector_store %arg12[%c0_59, %c0_60, %c0_61], %172 {strides = array<i32>} : memref<2x8x32xf32, #tpu.memory_space<vmem>>, vector<2x8x32xf32>,
    return
  }
  func.func @transform_0(%arg0: i32) -> (i32, i32, i32) {
    %c0_i32 = arith.constant 0 : i32
    %c0_i32_0 = arith.constant 0 : i32
    %c0_i32_1 = arith.constant 0 : i32
    return %arg0, %c0_i32, %c0_i32_0 : i32, i32, i32
  }
  func.func @transform_1(%arg0: i32) -> (i32, i32) {
    %c0_i32 = arith.constant 0 : i32
    %c0_i32_0 = arith.constant 0 : i32
    %c0_i32_1 = arith.constant 0 : i32
    return %c0_i32, %c0_i32_0 : i32, i32
  }
  func.func @transform_2(%arg0: i32) -> (i32, i32) {
    %c0_i32 = arith.constant 0 : i32
    %c0_i32_0 = arith.constant 0 : i32
    %c0_i32_1 = arith.constant 0 : i32
    return %c0_i32, %c0_i32_0 : i32, i32
  }
  func.func @transform_3(%arg0: i32) -> (i32, i32) {
    %c0_i32 = arith.constant 0 : i32
    %c0_i32_0 = arith.constant 0 : i32
    %c0_i32_1 = arith.constant 0 : i32
    return %c0_i32, %c0_i32_0 : i32, i32
  }
  func.func @transform_4(%arg0: i32) -> (i32, i32) {
    %c0_i32 = arith.constant 0 : i32
    %c0_i32_0 = arith.constant 0 : i32
    %c0_i32_1 = arith.constant 0 : i32
    return %c0_i32, %c0_i32_0 : i32, i32
  }
  func.func @transform_5(%arg0: i32) -> (i32, i32) {
    %c0_i32 = arith.constant 0 : i32
    %c0_i32_0 = arith.constant 0 : i32
    %c0_i32_1 = arith.constant 0 : i32
    return %c0_i32, %c0_i32_0 : i32, i32
  }
  func.func @transform_6(%arg0: i32) -> (i32, i32) {
    %c0_i32 = arith.constant 0 : i32
    %c0_i32_0 = arith.constant 0 : i32
    %c0_i32_1 = arith.constant 0 : i32
    return %c0_i32, %c0_i32_0 : i32, i32
  }
  func.func @transform_7(%arg0: i32) -> (i32, i32) {
    %c0_i32 = arith.constant 0 : i32
    %c0_i32_0 = arith.constant 0 : i32
    %c0_i32_1 = arith.constant 0 : i32
    return %c0_i32, %c0_i32_0 : i32, i32
  }
  func.func @transform_8(%arg0: i32) -> (i32, i32) {
    %c0_i32 = arith.constant 0 : i32
    %c0_i32_0 = arith.constant 0 : i32
    %c0_i32_1 = arith.constant 0 : i32
    return %c0_i32, %c0_i32_0 : i32, i32
  }
  func.func @transform_9(%arg0: i32) -> (i32, i32) {
    %c0_i32 = arith.constant 0 : i32
    %c0_i32_0 = arith.constant 0 : i32
    %c0_i32_1 = arith.constant 0 : i32
    return %c0_i32, %c0_i32_0 : i32, i32
  }
  func.func @transform_10(%arg0: i32) -> (i32, i32) {
    %c0_i32 = arith.constant 0 : i32
    %c0_i32_0 = arith.constant 0 : i32
    %c0_i32_1 = arith.constant 0 : i32
    return %c0_i32, %c0_i32_0 : i32, i32
  }
  func.func @transform_11(%arg0: i32) -> (i32, i32, i32) {
    %c0_i32 = arith.constant 0 : i32
    %c0_i32_0 = arith.constant 0 : i32
    %c0_i32_1 = arith.constant 0 : i32
    return %arg0, %c0_i32, %c0_i32_0 : i32, i32, i32
  }
}

</mosaic_0001>

<bundles_post_ra>
// kernel: tpu_custom_call.1
= control target key start
LH: loop header
LB: loop body
LE: loop exit
PB: predicated region body
PF: predicated region fallthrough
CT: control target
= control target key end

     0   :  { %16 = vsyncpa [#allocation3], 0  ;;  %s2220_s0 = inlined_call_operand.vmem [shape: f32[2,8,32], index: 0, kind: input, shape index: {}]   ;;  %s2221_s1 = inlined_call_operand.vmem [shape: f32[1,32], index: 1, kind: input, shape index: {}]   ;;  %s2222_s2 = inlined_call_operand.vmem [shape: f32[1,32], index: 2, kind: input, shape index: {}]   ;;  %s2223_s3 = inlined_call_operand.vmem [shape: bf16[32,96], index: 3, kind: input, shape index: {}]   ;;  %s2224_s4 = inlined_call_operand.vmem [shape: bf16[32,32], index: 4, kind: input, shape index: {}]   ;;  %s2225_s5 = inlined_call_operand.vmem [shape: f32[1,32], index: 5, kind: input, shape index: {}]   ;;  %s2226_s6 = inlined_call_operand.vmem [shape: f32[1,32], index: 6, kind: input, shape index: {}]   ;;  %s2227_s7 = inlined_call_operand.hbm [shape: bf16[32,64], index: 7, kind: input, shape index: {}]   ;;  %s2228_s8 = inlined_call_operand.vmem [shape: f32[1,64], index: 8, kind: input, shape index: {}]   ;;  %s2229_s9 = inlined_call_operand.vmem [shape: bf16[64,32], index: 9, kind: input, shape index: {}]   ;;  %s2230_s10 = inlined_call_operand.vmem [shape: f32[1,32], index: 10, kind: input, shape index: {}]   ;;  %s2231_s11 = inlined_call_operand.hbm [shape: f32[2,8,32], index: 11, kind: output, shape index: {}]  }
   0x1   :  { %17 = vsyncpa [#allocation4], 0  ;;  %s1847_s17 = smov [#allocation2]   ;;  %s1799_s21 = scalar_lea.hbm %s2227_s7, 256 }
   0x2   :  { %s37_s18 = sshll.u32 %s1847_s17, 4  ;;  %p1800_p0 = scmp.ne.s32.totalorder %s2227_s7, %s1799_s21  ;;  %s38_s18 = int_to_ptr.vmem [resolvable:$true] %s37_s18 }
   0x3   :  { %p1803_p1 = scmp.lt.u32.totalorder %s1799_s21, %s2227_s7 }
   0x5   :  { %p1805_p2 = pnand %p1803_p1, %p1800_p0 }
   0x7   :  { %1808 = shalt.err (!%p1805_p2)
}
   0x8   :  { %s1809_s26 = scalar_lea.vmem %s38_s18, 256  ;;  %p1814_p4 = scmp.lt.s32.totalorder %s38_s18, %s38_s18 }
   0x9   :  { %p1810_p3 = scmp.ne.s32.totalorder %s38_s18, %s1809_s26  ;;  %p1815_p5 = scmp.lt.s32.totalorder %s1809_s26, %s1809_s26 }
   0xb   :  { %p1816_p6 = por %p1815_p5, %p1814_p4 }
   0xd   :  { %p1817_p7 = pnand %p1816_p6, %p1810_p3 }
   0xf   :  { %1820 = shalt.err (!%p1817_p7)
}
  0x10   :  { %s1848_s27 = smov 64   ;;  %s1849_s28 = smov 4  }
  0x11   :  { %43 = dma.hbm_to_vmem [thread:$0]  %s2227_s7, 256, %s38_s18, [#allocation3], %s1848_s27, %s1848_s27, %s1849_s28  }
  0x12   :  { %1843 = dma.done.wait [#allocation3], 256  }
  0x13   :  { %1844 = vsyncadd [#allocation3], 4294967040  ;;  %vm58_vm0 = vcmask 261120   ;;  %v1942_v0 = vld [vmem:[%s2220_s0] sm:$0xff]  ;;  %v1947_v1 = vld [vmem:[%s2220_s0 + $0x8] sm:$0xff]  ;;  %v1850_v15 = vmov 0.0  }
  0x14   :  { %v59_v2 = vsel %vm58_vm0, %v1942_v0, 0.0  ;;  %v62_v3 = vsel %vm58_vm0, %v1947_v1, 0.0  ;;  %v1747_v14 = vld [vmem:[%s2223_s3] sm:$0xff]   ;;  %1581 = vmatprep.subr.bf16.mxu1 %v1850_v15  ;;  %1595 = vmatprep.subr.bf16.mxu0 %v1850_v15  ;;  %v1748_v16 = vld [vmem:[%s2223_s3 + $0x8] sm:$0xff]   ;;  %vm1851_vm1 = vmmov 0   ;;  %vm182_vm2 = vcmask 64512  }
  0x15   :  { %60 = vadd.xlane.f32.xlu0 %v59_v2  ;;  %1582 = vmatpush3.bf16.msra.mxu1 %v1747_v14  ;;  %v1485_v25 = vld [vmem:[%s2221_s1] ss:$0 sm:$0xff]  ;;  %s1852_s1 = smov 96   ;;  %vm307_vm3 = vcmask 1043456   ;;  %s1854_s21 = smov 120   ;;  %vm1419_vm4 = vcmask 523264  }
  0x16   :  { %1585 = vmatprep.mubr.msk.bf16.mxu1 %vm1851_vm1, %v1850_v15  ;;  %1583 = vmatprep.subr.bf16.mxu1 %v1850_v15  ;;  %v1486_v29 = vld [vmem:[%s2222_s2] ss:$0 sm:$0xff]  ;;  %s1853_s2 = smov 88   ;;  %s1855_s22 = smov 56  }
  0x17   :  { %1597 = vmatprep.mubr.msk.bf16.mxu0 %vm1851_vm1, %v1850_v15  ;;  %s1856_s23 = smov 80   ;;  %s1857_s24 = smov 112  }
  0x18   :  { %s1858_s29 = smov 48   ;;  %s1859_s30 = smov 72  }
  0x19   :  { %63 = vadd.xlane.f32.xlu0 %v62_v3  ;;  %1584 = vmatpush3.bf16.msra.mxu1 %v1748_v16  ;;  %s1860_s12 = smov 104   ;;  %s1861_s15 = smov 40  }
  0x1a   :  { %1589 = vmatprep.subr.bf16.mxu1 %v1850_v15 }
  0xa2   :  { %v61_v4 = vpop.xlane.xlu0 %60 }
  0xa3   :  { %v66_v5 = vmul.f32 0.03125, %v61_v4 }
  0xa5   :  { %v68_v6 = vsub.f32 %v1942_v0, %v66_v5 }
  0xa6   :  { %v64_v7 = vpop.xlane.xlu0 %63 }
  0xa7   :  { %v67_v8 = vmul.f32 0.03125, %v64_v7  ;;  %v70_v9 = vmul.f32 %v68_v6, %v68_v6 }
  0xa9   :  { %v69_v10 = vsub.f32 %v1947_v1, %v67_v8  ;;  %v72_v11 = vsel %vm58_vm0, %v70_v9, 0.0 }
  0xaa   :  { %73 = vadd.xlane.f32.xlu1 %v72_v11 }
  0xab   :  { %v71_v12 = vmul.f32 %v69_v10, %v69_v10 }
  0xad   :  { %v75_v13 = vsel %vm58_vm0, %v71_v12, 0.0 }
  0xae   :  { %76 = vadd.xlane.f32.xlu1 %v75_v13 }
 0x137   :  { %v74_v17 = vpop.xlane.xlu1 %73 }
 0x138   :  { %v78_v18 = vmul.f32 0.03125, %v74_v17 }
 0x13a   :  { %v80_v19 = vadd.f32 1e-05, %v78_v18 }
 0x13b   :  { %v77_v20 = vpop.xlane.xlu1 %76 }
 0x13c   :  { %1755 = vrsqrt.f32 %v80_v19  ;;  %v79_v21 = vmul.f32 0.03125, %v77_v20 }
 0x13e   :  { %v81_v22 = vadd.f32 1e-05, %v79_v21 }
 0x140   :  { %1757 = vrsqrt.f32 %v81_v22 }
 0x146   :  { %v1756_v23 = vpop.eup %1755 }
 0x147   :  { %v84_v24 = vmul.f32 %v1756_v23, %v68_v6 }
 0x149   :  { %v92_v28 = vmul.f32 %v1485_v25, %v84_v24 }
 0x14a   :  { %v1758_v26 = vpop.eup %1757 }
 0x14b   :  { %v85_v27 = vmul.f32 %v1758_v26, %v69_v10  ;;  %v100_v31 = vadd.f32 %v1486_v29, %v92_v28 }
 0x14d   :  { %v93_v30 = vmul.f32 %v1485_v25, %v85_v27 }
 0x14f   :  { %v101_v32 = vadd.f32 %v1486_v29, %v93_v30 }
 0x151   :  { %v102_v33 = vpack.c.bf16 %v101_v32, %v100_v31 }
 0x153   :  { %1586 = vmatmul.mubr.msk.bf16.vlgmr.msra.gmra.mrb[0].mxu1 %vm58_vm0, %v102_v33 }
 0x154   :  { %1591 = vmatprep.mubr.msk.bf16.mxu1 %vm1851_vm1, %v1850_v15 }
 0x226   :  { %v156_v34 = vpop.f32.mrb[0].mxu1 }
 0x227   :  { %v1980_v35 = vpack.c.bf16 %v156_v34, %v156_v34  ;;  %v1587_v36 = vpop.f32.mrb[1].mxu1  ;;  %v163_v43 = vmul.f32 0.35355338, %v156_v34 }
 0x228   :  { %v159_v37 = vpop.f32.mrb[2].mxu1 }
 0x229   :  { %v1982_v38 = vpack.c.bf16 %v159_v37, %v159_v37  ;;  %180 = vrot.lane.b32.xlu0 %v1980_v35, %s1852_s1  ;;  %v1588_v39 = vpop.f32.mrb[3].mxu1  ;;  %v164_v45 = vmul.f32 0.35355338, %v159_v37  ;;  %v1990_v46 = vpack.c.bf16 %v163_v43, %v163_v43 }
 0x22b   :  { %230 = vrot.lane.b32.xlu1 %v1982_v38, %s1852_s1  ;;  %v1992_v47 = vpack.c.bf16 %v164_v45, %v164_v45 }
 0x29b   :  { %v181_v40 = vpop.permute.xlu0 %180 }
 0x29c   :  { %v187_v41 = vsel %vm182_vm2, %v181_v40, 0 }
 0x29d   :  { %1590 = vmatpush3.bf16.xpose.msra.mxu1 %v187_v41  ;;  %v231_v42 = vpop.permute.xlu1 %230 }
 0x29e   :  { %v236_v44 = vsel %vm182_vm2, %v231_v42, 0  ;;  %1601 = vmatprep.subr.bf16.mxu1 %v1850_v15 }
 0x29f   :  { %1596 = vmatpush3.bf16.xpose.msra.mxu0 %v236_v44 }
 0x2a0   :  { %1607 = vmatprep.subr.bf16.mxu0 %v1850_v15 }
 0x2a4   :  { %1592 = vmatmul.mubr.msk.bf16.vlgmr.msra.gmra.mrb[4].mxu1 %vm182_vm2, %v1990_v46 }
 0x2a5   :  { %1603 = vmatprep.mubr.msk.bf16.mxu1 %vm1851_vm1, %v1850_v15 }
 0x2a6   :  { %1598 = vmatmul.mubr.msk.bf16.vlgmr.msra.gmra.mrb[0].mxu0 %vm182_vm2, %v1992_v47 }
 0x2a7   :  { %1609 = vmatprep.mubr.msk.bf16.mxu0 %vm1851_vm1, %v1850_v15 }
 0x377   :  { %v223_v48 = vpop.f32.mrb[4].mxu1 }
 0x378   :  { %v1593_v49 = vpop.f32.mrb[5].mxu1  ;;  %v278_v50 = vsel %vm182_vm2, %v223_v48, -inf }
 0x379   :  { %v272_v51 = vpop.f32.mrb[0].mxu0  ;;  %279 = vmax.xlane.f32.xlu1 %v278_v50  ;;  %v226_v52 = vpop.f32.mrb[6].mxu1 }
 0x37a   :  { %v1594_v53 = vpop.f32.mrb[7].mxu1  ;;  %v1599_v54 = vpop.f32.mrb[1].mxu0  ;;  %v281_v55 = vsel %vm182_vm2, %v272_v51, -inf }
 0x37b   :  { %282 = vmax.xlane.f32.xlu0 %v281_v55  ;;  %v275_v56 = vpop.f32.mrb[2].mxu0 }
 0x37c   :  { %v1600_v57 = vpop.f32.mrb[3].mxu0 }
 0x38a   :  { %351 = vrot.lane.b32.xlu1 %v1982_v38, %s1848_s27 }
 0x38e   :  { %402 = vrot.lane.b32.xlu1 %v1980_v35, %s1853_s2 }
 0x406   :  { %v280_v58 = vpop.xlane.xlu1 %279 }
 0x407   :  { %v284_v59 = vsub.f32 %v223_v48, %v280_v58 }
 0x408   :  { %v283_v60 = vpop.xlane.xlu0 %282 }
 0x409   :  { %v286_v61 = vmul.f32 1.442695, %v284_v59  ;;  %v285_v62 = vsub.f32 %v272_v51, %v283_v60 }
 0x40a   :  { %v352_v63 = vpop.permute.xlu1 %351 }
 0x40b   :  { %1759 = vpow2.f32 %v286_v61  ;;  %v288_v2 = vmul.f32 1.442695, %v285_v62  ;;  %v357_v3 = vsel %vm307_vm3, %v352_v63, 0 }
 0x40c   :  { %1608 = vmatpush3.bf16.msra.mxu0 %v357_v3  ;;  %v176_v3 = vld [vmem:[%s2224_s4 + $0x4] sm:$0xf] }
 0x40d   :  { %1761 = vpow2.f32 %v288_v2  ;;  %1619 = vmatprep.subr.bf16.mxu0 %v1850_v15 }
 0x40e   :  { %v403_v8 = vpop.permute.xlu1 %402 }
 0x40f   :  { %v408_v20 = vsel %vm182_vm2, %v403_v8, 0  ;;  %v175_v8 = vld [vmem:[%s2224_s4] sm:$0xf] }
 0x415   :  { %v1760_v4 = vpop.eup %1759 }
 0x416   :  { %v290_v5 = vsel %vm182_vm2, %v1760_v4, 0.0 }
 0x417   :  { %v1762_v6 = vpop.eup %1761  ;;  %291 = vadd.xlane.f32.xlu0 %v290_v5 }
 0x418   :  { %v293_v7 = vsel %vm182_vm2, %v1762_v6, 0.0 }
 0x419   :  { %294 = vadd.xlane.f32.xlu1 %v293_v7 }
 0x42a   :  { %452 = vrot.lane.b32.xlu1 %v1982_v38, %s1853_s2 }
 0x42d   :  { %302 = vrot.lane.b32.xlu0 %v1980_v35, %s1848_s27 }
 0x42e   :  { %450 = vrot.lane.b32.xlu1 %v1992_v47, %s1854_s21 }
 0x431   :  { %400 = vrot.lane.b32.xlu0 %v1990_v46, %s1854_s21 }
 0x4a4   :  { %v292_v9 = vpop.xlane.xlu0 %291 }
 0x4a5   :  { %1763 = vrcp.f32 %v292_v9 }
 0x4a6   :  { %v295_v10 = vpop.xlane.xlu1 %294 }
 0x4a7   :  { %1765 = vrcp.f32 %v295_v10 }
 0x4a8   :  { %v303_v11 = vpop.permute.xlu0 %302 }
 0x4a9   :  { %v309_v12 = vsel %vm307_vm3, %v303_v11, 0  ;;  %v672_v11 = vsel %vm307_vm3, %v175_v8, 0 }
 0x4aa   :  { %1602 = vmatpush3.bf16.msra.mxu1 %v309_v12  ;;  %v453_v19 = vpop.permute.xlu1 %452 }
 0x4ab   :  { %1613 = vmatprep.subr.bf16.mxu1 %v1850_v15  ;;  %v458_v22 = vsel %vm182_vm2, %v453_v19, 0 }
 0x4ac   :  { %v401_v23 = vpop.permute.xlu0 %400 }
 0x4ae   :  { %v451_v24 = vpop.permute.xlu1 %450 }
 0x4af   :  { %v1764_v13 = vpop.eup %1763 }
 0x4b0   :  { %v298_v14 = vmul.f32 %v1764_v13, %v1760_v4 }
 0x4b1   :  { %v1766_v16 = vpop.eup %1765 }
 0x4b2   :  { %v299_v17 = vmul.f32 %v1766_v16, %v1762_v6  ;;  %v300_v18 = vpack.c.bf16 %v298_v14, %v298_v14  ;;  %v625_v6 = vsel %vm307_vm3, %v176_v3, 0 }
 0x4b4   :  { %1604 = vmatmul.mubr.msk.bf16.vlgmr.msra.gmra.mrb[8].mxu1 %vm182_vm2, %v300_v18  ;;  %v301_v21 = vpack.c.bf16 %v299_v17, %v299_v17 }
 0x4b5   :  { %1614 = vmatpush3.bf16.xpose.msra.mxu1 %v408_v20  ;;  %1615 = vmatprep.mubr.msk.bf16.mxu1 %vm1851_vm1, %v1850_v15 }
 0x4b6   :  { %1610 = vmatmul.mubr.msk.bf16.vlgmr.msra.gmra.mrb[4].mxu0 %vm182_vm2, %v301_v21  ;;  %1625 = vmatprep.subr.bf16.mxu1 %v1850_v15 }
 0x4b7   :  { %1620 = vmatpush3.bf16.xpose.msra.mxu0 %v458_v22  ;;  %1621 = vmatprep.mubr.msk.bf16.mxu0 %vm1851_vm1, %v1850_v15 }
 0x4b8   :  { %1631 = vmatprep.subr.bf16.mxu0 %v1850_v15 }
 0x4bc   :  { %1616 = vmatmul.mubr.msk.bf16.vlgmr.msra.gmra.mrb[12].mxu1 %vm182_vm2, %v401_v23 }
 0x4bd   :  { %1627 = vmatprep.mubr.msk.bf16.mxu1 %vm1851_vm1, %v1850_v15 }
 0x4be   :  { %1622 = vmatmul.mubr.msk.bf16.vlgmr.msra.gmra.mrb[8].mxu0 %vm182_vm2, %v451_v24 }
 0x4bf   :  { %1633 = vmatprep.mubr.msk.bf16.mxu0 %vm1851_vm1, %v1850_v15 }
 0x587   :  { %v2034_v25 = vpop.f32.mrb[8].mxu1 }
 0x588   :  { %v1605_v26 = vpop.f32.mrb[9].mxu1 }
 0x589   :  { %v348_v27 = vpop.f32.mrb[10].mxu1  ;;  %v2036_v28 = vpop.f32.mrb[4].mxu0 }
 0x58a   :  { %v399_v29 = vpack.c.bf16 %v2036_v28, %v2034_v25  ;;  %v1606_v30 = vpop.f32.mrb[11].mxu1  ;;  %v1611_v31 = vpop.f32.mrb[5].mxu0 }
 0x58b   :  { %v396_v32 = vpop.f32.mrb[6].mxu0 }
 0x58c   :  { %v1612_v33 = vpop.f32.mrb[7].mxu0 }
 0x58f   :  { %v444_v34 = vpop.f32.mrb[12].mxu1 }
 0x590   :  { %v1617_v36 = vpop.f32.mrb[13].mxu1  ;;  %v500_v37 = vsel %vm182_vm2, %v444_v34, -inf }
 0x591   :  { %v494_v39 = vpop.f32.mrb[8].mxu0  ;;  %501 = vmax.xlane.f32.xlu0 %v500_v37  ;;  %v447_v40 = vpop.f32.mrb[14].mxu1 }
 0x592   :  { %v1618_v41 = vpop.f32.mrb[15].mxu1  ;;  %v1623_v42 = vpop.f32.mrb[9].mxu0  ;;  %v503_v43 = vsel %vm182_vm2, %v494_v39, -inf }
 0x593   :  { %504 = vmax.xlane.f32.xlu1 %v503_v43  ;;  %v497_v44 = vpop.f32.mrb[10].mxu0 }
 0x594   :  { %v1624_v45 = vpop.f32.mrb[11].mxu0 }
 0x5a4   :  { %572 = vrot.lane.b32.xlu1 %v1982_v38, %s1855_s22 }
 0x5a8   :  { %717 = vrot.lane.b32.xlu1 %v1980_v35, %s1856_s23 }
 0x5ac   :  { %767 = vrot.lane.b32.xlu1 %v1982_v38, %s1856_s23 }
 0x5b0   :  { %765 = vrot.lane.b32.xlu1 %v1992_v47, %s1857_s24 }
 0x61e   :  { %v502_v48 = vpop.xlane.xlu0 %501 }
 0x61f   :  { %v506_v49 = vsub.f32 %v444_v34, %v502_v48 }
 0x620   :  { %v505_v50 = vpop.xlane.xlu1 %504 }
 0x621   :  { %v508_v51 = vmul.f32 1.442695, %v506_v49  ;;  %v507_v52 = vsub.f32 %v494_v39, %v505_v50 }
 0x623   :  { %1767 = vpow2.f32 %v508_v51  ;;  %v510_v53 = vmul.f32 1.442695, %v507_v52 }
 0x624   :  { %v573_v54 = vpop.permute.xlu1 %572 }
 0x625   :  { %1769 = vpow2.f32 %v510_v53  ;;  %v578_v55 = vsel %vm307_vm3, %v573_v54, 0 }
 0x626   :  { %1632 = vmatpush3.bf16.msra.mxu0 %v578_v55 }
 0x627   :  { %1643 = vmatprep.subr.bf16.mxu0 %v1850_v15 }
 0x628   :  { %v718_v12 = vpop.permute.xlu1 %717 }
 0x629   :  { %v723_v25 = vsel %vm182_vm2, %v718_v12, 0 }
 0x62c   :  { %v768_v13 = vpop.permute.xlu1 %767 }
 0x62d   :  { %v1768_v56 = vpop.eup %1767  ;;  %v773_v14 = vsel %vm182_vm2, %v768_v13, 0 }
 0x62e   :  { %v512_v57 = vsel %vm182_vm2, %v1768_v56, 0.0 }
 0x62f   :  { %v1770_v58 = vpop.eup %1769  ;;  %513 = vadd.xlane.f32.xlu0 %v512_v57 }
 0x630   :  { %v515_v59 = vsel %vm182_vm2, %v1770_v58, 0.0  ;;  %v766_v16 = vpop.permute.xlu1 %765 }
 0x633   :  { %516 = vadd.xlane.f32.xlu0 %v515_v59 }
 0x649   :  { %524 = vrot.lane.b32.xlu0 %v1980_v35, %s1855_s22 }
 0x64d   :  { %715 = vrot.lane.b32.xlu0 %v1990_v46, %s1857_s24  ;;  %s1862_s24 = smov [#allocation5]  }
 0x64e   :  { %s1473_s25 = sshll.u32 %s1862_s24, 4  ;;  %s1474_s25 = int_to_ptr.vmem [resolvable:$true] %s1473_s25 }
 0x64f   :  { %s1821_s26 = scalar_lea.vmem %s1474_s25, 256  ;;  %p1826_p9 = scmp.lt.s32.totalorder %s1474_s25, %s1474_s25 }
 0x650   :  { %p1822_p8 = scmp.ne.s32.totalorder %s1474_s25, %s1821_s26  ;;  %p1827_p10 = scmp.lt.s32.totalorder %s1821_s26, %s1821_s26 }
 0x652   :  { %p1828_p11 = por %p1827_p10, %p1826_p9 }
 0x654   :  { %p1829_p12 = pnand %p1828_p11, %p1822_p8 }
 0x6bc   :  { %v514_v60 = vpop.xlane.xlu0 %513 }
 0x6bd   :  { %1771 = vrcp.f32 %v514_v60 }
 0x6c0   :  { %v517_v61 = vpop.xlane.xlu0 %516 }
 0x6c1   :  { %1773 = vrcp.f32 %v517_v61 }
 0x6c4   :  { %v525_v62 = vpop.permute.xlu0 %524 }
 0x6c5   :  { %v530_v63 = vsel %vm307_vm3, %v525_v62, 0 }
 0x6c6   :  { %1626 = vmatpush3.bf16.msra.mxu1 %v530_v63 }
 0x6c7   :  { %v1772_v2 = vpop.eup %1771  ;;  %1637 = vmatprep.subr.bf16.mxu1 %v1850_v15 }
 0x6c8   :  { %v520_v4 = vmul.f32 %v1772_v2, %v1768_v56 }
 0x6ca   :  { %v522_v5 = vpack.c.bf16 %v520_v4, %v520_v4 }
 0x6cb   :  { %v1774_v7 = vpop.eup %1773 }
 0x6cc   :  { %v521_v9 = vmul.f32 %v1774_v7, %v1770_v58  ;;  %1628 = vmatmul.mubr.msk.bf16.vlgmr.msra.gmra.mrb[16].mxu1 %vm182_vm2, %v522_v5 }
 0x6cd   :  { %1638 = vmatpush3.bf16.msra.mxu1 %v625_v6  ;;  %1639 = vmatprep.mubr.msk.bf16.mxu1 %vm1851_vm1, %v1850_v15 }
 0x6ce   :  { %v523_v10 = vpack.c.bf16 %v521_v9, %v521_v9  ;;  %1649 = vmatprep.subr.bf16.mxu1 %v1850_v15 }
 0x6d0   :  { %1634 = vmatmul.mubr.msk.bf16.vlgmr.msra.gmra.mrb[12].mxu0 %vm182_vm2, %v523_v10 }
 0x6d1   :  { %1644 = vmatpush3.bf16.msra.mxu0 %v672_v11  ;;  %1645 = vmatprep.mubr.msk.bf16.mxu0 %vm1851_vm1, %v1850_v15 }
 0x6d2   :  { %1655 = vmatprep.subr.bf16.mxu0 %v1850_v15 }
 0x6d8   :  { %1646 = vmatmul.mubr.msk.bf16.vlgmr.msra.gmra.mrb[16].mxu0 %vm182_vm2, %v399_v29  ;;  %v716_v29 = vpop.permute.xlu0 %715 }
 0x6d9   :  { %1657 = vmatprep.mubr.msk.bf16.mxu0 %vm1851_vm1, %v1850_v15 }
 0x6da   :  { %1656 = vmatpush3.bf16.xpose.msra.mxu0 %v773_v14 }
 0x6db   :  { %1667 = vmatprep.subr.bf16.mxu0 %v1850_v15 }
 0x6e1   :  { %1658 = vmatmul.mubr.msk.bf16.vlgmr.msra.gmra.mrb[20].mxu0 %vm182_vm2, %v766_v16 }
 0x6e2   :  { %1669 = vmatprep.mubr.msk.bf16.mxu0 %vm1851_vm1, %v1850_v15 }
 0x79f   :  { %v566_v17 = vpop.f32.mrb[16].mxu1 }
 0x7a0   :  { %v1629_v18 = vpop.f32.mrb[17].mxu1 }
 0x7a1   :  { %v569_v19 = vpop.f32.mrb[18].mxu1  ;;  %v177_v18 = vld [vmem:[%s2224_s4 + $0x8] sm:$0xf] }
 0x7a2   :  { %v1630_v20 = vpop.f32.mrb[19].mxu1  ;;  %v940_v19 = vsel %vm307_vm3, %v177_v18, 0 }
 0x7a3   :  { %v614_v21 = vpop.f32.mrb[12].mxu0 }
 0x7a4   :  { %v620_v22 = vpack.c.bf16 %v614_v21, %v566_v17  ;;  %v1635_v23 = vpop.f32.mrb[13].mxu0 }
 0x7a5   :  { %v617_v24 = vpop.f32.mrb[14].mxu0 }
 0x7a6   :  { %v1636_v26 = vpop.f32.mrb[15].mxu0  ;;  %1640 = vmatmul.mubr.msk.bf16.vlgmr.msra.gmra.mrb[20].mxu1 %vm182_vm2, %v620_v22 }
 0x7a7   :  { %1650 = vmatpush3.bf16.xpose.msra.mxu1 %v723_v25  ;;  %1651 = vmatprep.mubr.msk.bf16.mxu1 %vm1851_vm1, %v1850_v15 }
 0x7a8   :  { %1661 = vmatprep.subr.bf16.mxu1 %v1850_v15 }
 0x7ab   :  { %v708_v27 = vpop.f32.mrb[16].mxu0 }
 0x7ac   :  { %v1647_v28 = vpop.f32.mrb[17].mxu0 }
 0x7ad   :  { %v711_v30 = vpop.f32.mrb[18].mxu0 }
 0x7ae   :  { %v1648_v31 = vpop.f32.mrb[19].mxu0  ;;  %1652 = vmatmul.mubr.msk.bf16.vlgmr.msra.gmra.mrb[24].mxu1 %vm182_vm2, %v716_v29 }
 0x7af   :  { %1663 = vmatprep.mubr.msk.bf16.mxu1 %vm1851_vm1, %v1850_v15 }
 0x7b4   :  { %v809_v32 = vpop.f32.mrb[20].mxu0 }
 0x7b5   :  { %v1659_v33 = vpop.f32.mrb[21].mxu0  ;;  %v818_v34 = vsel %vm182_vm2, %v809_v32, -inf }
 0x7b6   :  { %819 = vmax.xlane.f32.xlu1 %v818_v34  ;;  %v812_v36 = vpop.f32.mrb[22].mxu0 }
 0x7b7   :  { %v1660_v37 = vpop.f32.mrb[23].mxu0 }
 0x7c7   :  { %887 = vrot.lane.b32.xlu1 %v1982_v38, %s1858_s29 }
 0x7cb   :  { %987 = vrot.lane.b32.xlu1 %v1980_v35, %s1859_s30 }
 0x7cf   :  { %1037 = vrot.lane.b32.xlu1 %v1982_v38, %s1859_s30 }
 0x7d3   :  { %1035 = vrot.lane.b32.xlu1 %v1992_v47, %s1860_s12 }
 0x843   :  { %v820_v39 = vpop.xlane.xlu1 %819 }
 0x844   :  { %v822_v42 = vsub.f32 %v809_v32, %v820_v39 }
 0x846   :  { %v825_v43 = vmul.f32 1.442695, %v822_v42 }
 0x847   :  { %v888_v40 = vpop.permute.xlu1 %887 }
 0x848   :  { %v893_v41 = vsel %vm307_vm3, %v888_v40, 0  ;;  %1775 = vpow2.f32 %v825_v43 }
 0x849   :  { %1668 = vmatpush3.bf16.msra.mxu0 %v893_v41 }
 0x84a   :  { %1679 = vmatprep.subr.bf16.mxu0 %v1850_v15 }
 0x84b   :  { %v988_v4 = vpop.permute.xlu1 %987 }
 0x84c   :  { %v993_v6 = vsel %vm182_vm2, %v988_v4, 0 }
 0x84f   :  { %v1038_v25 = vpop.permute.xlu1 %1037 }
 0x852   :  { %v1776_v54 = vpop.eup %1775 }
 0x853   :  { %v830_v57 = vsel %vm182_vm2, %v1776_v54, 0.0  ;;  %v1036_v32 = vpop.permute.xlu1 %1035 }
 0x879   :  { %v661_v44 = vpop.f32.mrb[20].mxu1 }
 0x87a   :  { %v2098_v45 = vadd.f32 %v708_v27, %v661_v44  ;;  %v1641_v48 = vpop.f32.mrb[21].mxu1 }
 0x87b   :  { %v664_v49 = vpop.f32.mrb[22].mxu1 }
 0x87c   :  { %v2100_v50 = vadd.f32 %v711_v30, %v664_v49  ;;  %v1642_v51 = vpop.f32.mrb[23].mxu1  ;;  %v1043_v30 = vsel %vm182_vm2, %v1038_v25, 0 }
 0x881   :  { %v759_v52 = vpop.f32.mrb[24].mxu1 }
 0x882   :  { %v1653_v47 = vpop.f32.mrb[25].mxu1  ;;  %v815_v53 = vsel %vm182_vm2, %v759_v52, -inf }
 0x883   :  { %816 = vmax.xlane.f32.xlu0 %v815_v53  ;;  %v762_v55 = vpop.f32.mrb[26].mxu1 }
 0x884   :  { %v1654_v56 = vpop.f32.mrb[27].mxu1 }
 0x887   :  { %831 = vadd.xlane.f32.xlu0 %v830_v57 }
 0x910   :  { %v817_v58 = vpop.xlane.xlu0 %816 }
 0x911   :  { %v821_v59 = vsub.f32 %v759_v52, %v817_v58 }
 0x913   :  { %v823_v60 = vmul.f32 1.442695, %v821_v59 }
 0x914   :  { %v832_v61 = vpop.xlane.xlu0 %831 }
 0x915   :  { %1777 = vpow2.f32 %v823_v60 }
 0x916   :  { %1779 = vrcp.f32 %v832_v61 }
 0x91f   :  { %v1778_v62 = vpop.eup %1777 }
 0x920   :  { %v1780_v63 = vpop.eup %1779  ;;  %v827_v2 = vsel %vm182_vm2, %v1778_v62, 0.0 }
 0x921   :  { %v836_v3 = vmul.f32 %v1780_v63, %v1776_v54  ;;  %828 = vadd.xlane.f32.xlu0 %v827_v2 }
 0x923   :  { %v838_v5 = vpack.c.bf16 %v836_v3, %v836_v3 }
 0x925   :  { %1670 = vmatmul.mubr.msk.bf16.vlgmr.msra.gmra.mrb[24].mxu0 %vm182_vm2, %v838_v5  ;;  %v178_v5 = vld [vmem:[%s2224_s4 + $0xc] sm:$0xf] }
 0x926   :  { %1680 = vmatpush3.bf16.xpose.msra.mxu0 %v993_v6  ;;  %1681 = vmatprep.mubr.msk.bf16.mxu0 %vm1851_vm1, %v1850_v15  ;;  %v1210_v6 = vsel %vm307_vm3, %v178_v5, 0 }
 0x927   :  { %1691 = vmatprep.subr.bf16.mxu0 %v1850_v15 }
 0x937   :  { %839 = vrot.lane.b32.xlu0 %v1980_v35, %s1858_s29 }
 0x93b   :  { %985 = vrot.lane.b32.xlu0 %v1990_v46, %s1860_s12 }
 0x9ae   :  { %v829_v7 = vpop.xlane.xlu0 %828 }
 0x9af   :  { %1781 = vrcp.f32 %v829_v7 }
 0x9b2   :  { %v840_v8 = vpop.permute.xlu0 %839 }
 0x9b3   :  { %v845_v9 = vsel %vm307_vm3, %v840_v8, 0 }
 0x9b4   :  { %1662 = vmatpush3.bf16.msra.mxu1 %v845_v9 }
 0x9b5   :  { %1673 = vmatprep.subr.bf16.mxu1 %v1850_v15 }
 0x9b6   :  { %v986_v10 = vpop.permute.xlu0 %985 }
 0x9b7   :  { %1682 = vmatmul.mubr.msk.bf16.vlgmr.msra.gmra.mrb[28].mxu0 %vm182_vm2, %v986_v10 }
 0x9b8   :  { %1693 = vmatprep.mubr.msk.bf16.mxu0 %vm1851_vm1, %v1850_v15 }
 0x9b9   :  { %v1782_v11 = vpop.eup %1781 }
 0x9ba   :  { %v835_v12 = vmul.f32 %v1782_v11, %v1778_v62 }
 0x9bc   :  { %v837_v13 = vpack.c.bf16 %v835_v12, %v835_v12 }
 0x9be   :  { %1664 = vmatmul.mubr.msk.bf16.vlgmr.msra.gmra.mrb[28].mxu1 %vm182_vm2, %v837_v13 }
 0x9bf   :  { %1675 = vmatprep.mubr.msk.bf16.mxu1 %vm1851_vm1, %v1850_v15  ;;  %1674 = vmatpush3.bf16.msra.mxu1 %v940_v19 }
 0x9c0   :  { %1685 = vmatprep.subr.bf16.mxu1 %v1850_v15 }
 0x9f8   :  { %v929_v46 = vpop.f32.mrb[24].mxu0 }
 0x9f9   :  { %v1671_v14 = vpop.f32.mrb[25].mxu0 }
 0x9fa   :  { %v932_v16 = vpop.f32.mrb[26].mxu0 }
 0x9fb   :  { %v1672_v17 = vpop.f32.mrb[27].mxu0 }
 0xa8a   :  { %v1029_v20 = vpop.f32.mrb[28].mxu0 }
 0xa8b   :  { %v1683_v21 = vpop.f32.mrb[29].mxu0  ;;  %v1085_v22 = vsel %vm182_vm2, %v1029_v20, -inf }
 0xa8c   :  { %1086 = vmax.xlane.f32.xlu0 %v1085_v22  ;;  %v1032_v23 = vpop.f32.mrb[30].mxu0 }
 0xa8d   :  { %v1684_v24 = vpop.f32.mrb[31].mxu0 }
 0xa91   :  { %v881_v26 = vpop.f32.mrb[28].mxu1 }
 0xa92   :  { %v935_v27 = vpack.c.bf16 %v929_v46, %v881_v26  ;;  %v1665_v28 = vpop.f32.mrb[29].mxu1 }
 0xa93   :  { %v884_v29 = vpop.f32.mrb[30].mxu1 }
 0xa94   :  { %v1666_v31 = vpop.f32.mrb[31].mxu1  ;;  %1676 = vmatmul.mubr.msk.bf16.vlgmr.msra.gmra.mrb[32].mxu1 %vm182_vm2, %v935_v27 }
 0xa95   :  { %1686 = vmatpush3.bf16.xpose.msra.mxu1 %v1043_v30  ;;  %1687 = vmatprep.mubr.msk.bf16.mxu1 %vm1851_vm1, %v1850_v15 }
 0xa96   :  { %1697 = vmatprep.subr.bf16.mxu1 %v1850_v15 }
 0xa9c   :  { %1688 = vmatmul.mubr.msk.bf16.vlgmr.msra.gmra.mrb[36].mxu1 %vm182_vm2, %v1036_v32 }
 0xa9d   :  { %1699 = vmatprep.mubr.msk.bf16.mxu1 %vm1851_vm1, %v1850_v15 }
 0xb19   :  { %v1087_v33 = vpop.xlane.xlu0 %1086 }
 0xb1a   :  { %v1091_v34 = vsub.f32 %v1029_v20, %v1087_v33 }
 0xb1c   :  { %v1093_v36 = vmul.f32 1.442695, %v1091_v34  ;;  %v1749_v34 = vld [vmem:[#allocation2] sm:$0xff]  }
 0xb1e   :  { %1783 = vpow2.f32 %v1093_v36  ;;  %v1750_v36 = vld [vmem:[#allocation2 + $0x8] sm:$0xff]  }
 0xb28   :  { %v1784_v37 = vpop.eup %1783 }
 0xb29   :  { %v1097_v39 = vsel %vm182_vm2, %v1784_v37, 0.0 }
 0xb2a   :  { %1098 = vadd.xlane.f32.xlu0 %v1097_v39 }
 0xb67   :  { %v976_v40 = vpop.f32.mrb[32].mxu1 }
 0xb68   :  { %v983_v41 = vadd.f32 %v976_v40, %v2098_v45  ;;  %v1677_v42 = vpop.f32.mrb[33].mxu1 }
 0xb69   :  { %v979_v43 = vpop.f32.mrb[34].mxu1 }
 0xb6a   :  { %v984_v44 = vadd.f32 %v979_v43, %v2100_v50  ;;  %v1678_v48 = vpop.f32.mrb[35].mxu1 }
 0xb6b   :  { %v1514_v48 = vld [vmem:[%s2225_s5] ss:$0 sm:$0xff] }
 0xb6f   :  { %v1079_v49 = vpop.f32.mrb[36].mxu1 }
 0xb70   :  { %v1689_v51 = vpop.f32.mrb[37].mxu1  ;;  %v1088_v52 = vsel %vm182_vm2, %v1079_v49, -inf }
 0xb71   :  { %1089 = vmax.xlane.f32.xlu1 %v1088_v52  ;;  %v1082_v47 = vpop.f32.mrb[38].mxu1 }
 0xb72   :  { %v1690_v53 = vpop.f32.mrb[39].mxu1 }
 0xb73   :  { %v1515_v53 = vld [vmem:[%s2226_s6] ss:$0 sm:$0xff] }
 0xb82   :  { %1157 = vrot.lane.b32.xlu1 %v1982_v38, %s1861_s15 }
 0xbb7   :  { %v1099_v59 = vpop.xlane.xlu0 %1098 }
 0xbfe   :  { %v1090_v54 = vpop.xlane.xlu1 %1089 }
 0xbff   :  { %v1092_v55 = vsub.f32 %v1079_v49, %v1090_v54 }
 0xc01   :  { %v1095_v56 = vmul.f32 1.442695, %v1092_v55 }
 0xc02   :  { %v1158_v57 = vpop.permute.xlu1 %1157 }
 0xc03   :  { %1785 = vpow2.f32 %v1095_v56  ;;  %v1163_v45 = vsel %vm307_vm3, %v1158_v57, 0 }
 0xc04   :  { %1698 = vmatpush3.bf16.msra.mxu1 %v1163_v45  ;;  %1787 = vrcp.f32 %v1099_v59  ;;  %v1751_v45 = vld [vmem:[%s2229_s9] sm:$0xff]   ;;  %v1754_v59 = vld [vmem:[%s2229_s9 + $0x18] sm:$0xff]  }
 0xc05   :  { %1709 = vmatprep.subr.bf16.mxu1 %v1850_v15 }
 0xc0d   :  { %v1786_v50 = vpop.eup %1785 }
 0xc0e   :  { %v1100_v58 = vsel %vm182_vm2, %v1786_v50, 0.0  ;;  %v1788_v60 = vpop.eup %1787 }
 0xc0f   :  { %1101 = vadd.xlane.f32.xlu0 %v1100_v58  ;;  %v1105_v61 = vmul.f32 %v1788_v60, %v1784_v37  ;;  %v1753_v58 = vld [vmem:[%s2229_s9 + $0x10] sm:$0xff]   ;;  %v1516_v60 = vld [vmem:[%s2228_s8] ss:$0 sm:$0xff] }
 0xc11   :  { %v1107_v2 = vpack.c.bf16 %v1105_v61, %v1105_v61 }
 0xc25   :  { %1109 = vrot.lane.b32.xlu0 %v1980_v35, %s1861_s15 }
 0xc9c   :  { %v1102_v38 = vpop.xlane.xlu0 %1101 }
 0xc9d   :  { %1789 = vrcp.f32 %v1102_v38 }
 0xca0   :  { %v1110_v62 = vpop.permute.xlu0 %1109 }
 0xca1   :  { %v1115_v63 = vsel %vm307_vm3, %v1110_v62, 0 }
 0xca2   :  { %1692 = vmatpush3.bf16.msra.mxu0 %v1115_v63 }
 0xca3   :  { %1703 = vmatprep.subr.bf16.mxu0 %v1850_v15 }
 0xca5   :  { %1694 = vmatmul.mubr.msk.bf16.vlgmr.msra.gmra.mrb[32].mxu0 %vm182_vm2, %v1107_v2 }
 0xca6   :  { %1705 = vmatprep.mubr.msk.bf16.mxu0 %vm1851_vm1, %v1850_v15  ;;  %1704 = vmatpush3.bf16.msra.mxu0 %v1210_v6 }
 0xca7   :  { %v1790_v3 = vpop.eup %1789  ;;  %1717 = vmatprep.subr.bf16.mxu0 %v1850_v15 }
 0xca8   :  { %v1106_v35 = vmul.f32 %v1790_v3, %v1786_v50  ;;  %v1752_v50 = vld [vmem:[%s2229_s9 + $0x8] sm:$0xff]  }
 0xcaa   :  { %v1108_v4 = vpack.c.bf16 %v1106_v35, %v1106_v35 }
 0xcac   :  { %1700 = vmatmul.mubr.msk.bf16.vlgmr.msra.gmra.mrb[40].mxu1 %vm182_vm2, %v1108_v4 }
 0xcad   :  { %1713 = vmatprep.mubr.msk.bf16.mxu1 %vm1851_vm1, %v1850_v15  ;;  %1710 = vmatpush3.bf16.msra.mxu1 %v1749_v34 }
 0xcae   :  { %1711 = vmatprep.subr.bf16.mxu1 %v1850_v15 }
 0xcb1   :  { %1712 = vmatpush3.bf16.msra.mxu1 %v1750_v36 }
 0xd78   :  { %v1151_v7 = vpop.f32.mrb[32].mxu0 }
 0xd79   :  { %v1695_v8 = vpop.f32.mrb[33].mxu0 }
 0xd7a   :  { %v1154_v9 = vpop.f32.mrb[34].mxu0 }
 0xd7b   :  { %v1696_v10 = vpop.f32.mrb[35].mxu0 }
 0xd7f   :  { %v1199_v11 = vpop.f32.mrb[40].mxu1 }
 0xd80   :  { %v1205_v12 = vpack.c.bf16 %v1199_v11, %v1151_v7  ;;  %v1701_v13 = vpop.f32.mrb[41].mxu1 }
 0xd81   :  { %v1202_v46 = vpop.f32.mrb[42].mxu1  ;;  %v1520_v13 = vld [vmem:[%s2230_s10] ss:$0 sm:$0xff] }
 0xd82   :  { %v1702_v14 = vpop.f32.mrb[43].mxu1  ;;  %1706 = vmatmul.mubr.msk.bf16.vlgmr.msra.gmra.mrb[36].mxu0 %vm182_vm2, %v1205_v12 }
 0xd83   :  { %1725 = vmatprep.mubr.msk.bf16.mxu0 %vm1851_vm1, %v1850_v15  ;;  %1718 = vmatpush3.bf16.msra.mxu0 %v1751_v45 }
 0xd84   :  { %1719 = vmatprep.subr.bf16.mxu0 %v1850_v15 }
 0xd87   :  { %1720 = vmatpush3.bf16.msra.mxu0 %v1752_v50 }
 0xd88   :  { %1721 = vmatprep.subr.bf16.mxu0 %v1850_v15 }
 0xd8b   :  { %1722 = vmatpush3.bf16.msra.mxu0 %v1753_v58 }
 0xd8c   :  { %1723 = vmatprep.subr.bf16.mxu0 %v1850_v15 }
 0xd8f   :  { %1724 = vmatpush3.bf16.msra.mxu0 %v1754_v59 }
 0xe55   :  { %v1246_v16 = vpop.f32.mrb[36].mxu0 }
 0xe56   :  { %v1253_v17 = vadd.f32 %v1246_v16, %v983_v41  ;;  %v1707_v18 = vpop.f32.mrb[37].mxu0 }
 0xe57   :  { %v1249_v19 = vpop.f32.mrb[38].mxu0 }
 0xe58   :  { %v2162_v20 = vadd.f32 %v1253_v17, %v1942_v0  ;;  %v1254_v21 = vadd.f32 %v1249_v19, %v984_v44  ;;  %v1708_v22 = vpop.f32.mrb[39].mxu0 }
 0xe5a   :  { %v2165_v23 = vadd.f32 %v1254_v21, %v1947_v1  ;;  %v1259_v24 = vsel %vm58_vm0, %v2162_v20, 0.0 }
 0xe5b   :  { %1260 = vadd.xlane.f32.xlu1 %v1259_v24 }
 0xe5c   :  { %v1262_v25 = vsel %vm58_vm0, %v2165_v23, 0.0 }
 0xe5d   :  { %1263 = vadd.xlane.f32.xlu0 %v1262_v25 }
 0xee8   :  { %v1261_v26 = vpop.xlane.xlu1 %1260 }
 0xee9   :  { %v1265_v27 = vmul.f32 0.03125, %v1261_v26 }
 0xeea   :  { %v1264_v28 = vpop.xlane.xlu0 %1263 }
 0xeeb   :  { %v1267_v29 = vsub.f32 %v2162_v20, %v1265_v27  ;;  %v1266_v0 = vmul.f32 0.03125, %v1264_v28 }
 0xeed   :  { %v1268_v30 = vsub.f32 %v2165_v23, %v1266_v0  ;;  %v1269_v31 = vmul.f32 %v1267_v29, %v1267_v29 }
 0xeef   :  { %v1271_v1 = vsel %vm58_vm0, %v1269_v31, 0.0  ;;  %v1270_v32 = vmul.f32 %v1268_v30, %v1268_v30 }
 0xef0   :  { %1272 = vadd.xlane.f32.xlu0 %v1271_v1 }
 0xef1   :  { %v1274_v33 = vsel %vm58_vm0, %v1270_v32, 0.0 }
 0xef2   :  { %1275 = vadd.xlane.f32.xlu1 %v1274_v33 }
 0xf7d   :  { %v1273_v37 = vpop.xlane.xlu0 %1272 }
 0xf7e   :  { %v1277_v39 = vmul.f32 0.03125, %v1273_v37 }
 0xf7f   :  { %v1276_v40 = vpop.xlane.xlu1 %1275 }
 0xf80   :  { %v1279_v41 = vadd.f32 1e-05, %v1277_v39  ;;  %v1278_v42 = vmul.f32 0.03125, %v1276_v40 }
 0xf82   :  { %1791 = vrsqrt.f32 %v1279_v41  ;;  %v1280_v43 = vadd.f32 1e-05, %v1278_v42 }
 0xf84   :  { %1793 = vrsqrt.f32 %v1280_v43 }
 0xf8c   :  { %v1792_v44 = vpop.eup %1791 }
 0xf8d   :  { %v1283_v49 = vmul.f32 %v1792_v44, %v1267_v29 }
 0xf8e   :  { %v1794_v51 = vpop.eup %1793 }
 0xf8f   :  { %v1291_v52 = vmul.f32 %v1514_v48, %v1283_v49  ;;  %v1284_v47 = vmul.f32 %v1794_v51, %v1268_v30 }
 0xf91   :  { %v1292_v54 = vmul.f32 %v1514_v48, %v1284_v47  ;;  %v1299_v55 = vadd.f32 %v1515_v53, %v1291_v52 }
 0xf93   :  { %v1300_v56 = vadd.f32 %v1515_v53, %v1292_v54 }
 0xf95   :  { %v1301_v57 = vpack.c.bf16 %v1300_v56, %v1299_v55 }
 0xf97   :  { %1714 = vmatmul.mubr.msk.bf16.vlgmr.msra.gmra.mrb[44].mxu1 %vm58_vm0, %v1301_v57 }
0x106a   :  { %v1362_v38 = vpop.f32.mrb[44].mxu1 }
0x106b   :  { %v1363_v61 = vadd.f32 %v1516_v60, %v1362_v38  ;;  %v1715_v62 = vpop.f32.mrb[45].mxu1 }
0x106c   :  { %v1365_v63 = vpop.f32.mrb[46].mxu1 }
0x106d   :  { %v1371_v2 = vmul.f32 0.70710677, %v1363_v61  ;;  %v1366_v3 = vadd.f32 %v1516_v60, %v1365_v63  ;;  %v1716_v35 = vpop.f32.mrb[47].mxu1  ;;  %v1369_v7 = vmul.f32 0.5, %v1363_v61 }
0x106f   :  { %1795 = verf.f32 %v1371_v2  ;;  %v1372_v4 = vmul.f32 0.70710677, %v1366_v3  ;;  %v1370_v8 = vmul.f32 0.5, %v1366_v3 }
0x1071   :  { %1797 = verf.f32 %v1372_v4 }
0x1079   :  { %v1796_v15 = vpop.eup %1795 }
0x107a   :  { %v1375_v5 = vadd.f32 1.0, %v1796_v15 }
0x107b   :  { %v1798_v6 = vpop.eup %1797 }
0x107c   :  { %v1376_v9 = vadd.f32 1.0, %v1798_v6  ;;  %v1377_v10 = vmul.f32 %v1375_v5, %v1369_v7 }
0x107e   :  { %v1378_v11 = vmul.f32 %v1376_v9, %v1370_v8 }
0x1080   :  { %v1379_v12 = vpack.c.bf16 %v1378_v11, %v1377_v10 }
0x1082   :  { %1726 = vmatmul.mubr.msk.bf16.vlgmr.msra.gmra.mrb[40].mxu0 %vm1419_vm4, %v1379_v12 }
0x1155   :  { %v1457_v46 = vpop.f32.mrb[40].mxu0 }
0x1156   :  { %v1458_v14 = vadd.f32 %v1520_v13, %v1457_v46  ;;  %v1727_v16 = vpop.f32.mrb[41].mxu0 }
0x1157   :  { %v1460_v17 = vpop.f32.mrb[42].mxu0 }
0x1158   :  { %v1464_v18 = vadd.f32 %v1458_v14, %v2162_v20  ;;  %v1461_v19 = vadd.f32 %v1520_v13, %v1460_v17  ;;  %v1728_v21 = vpop.f32.mrb[43].mxu0 }
0x115a   :  { %1466 = vst.msk [vmem:[#allocation5] sm:$0xff] %vm58_vm0, %v1464_v18  ;;  %v1465_v22 = vadd.f32 %v1461_v19, %v2165_v23 }
0x115c   :  { %1467 = vst.msk [vmem:[#allocation5 + $0x8] sm:$0xff] %vm58_vm0, %v1465_v22 }
0x115d   :  { %1832 = shalt.err (!%p1829_p12)
}
0x115e   :  { %s1833_s28 = scalar_lea.hbm %s2231_s11, 256 }
0x115f   :  { %p1834_p13 = scmp.ne.s32.totalorder %s2231_s11, %s1833_s28  ;;  %p1837_p0 = scmp.lt.u32.totalorder %s1833_s28, %s2231_s11 }
0x1161   :  { %p1839_p1 = pnand %p1837_p0, %p1834_p13 }
0x1163   :  { %1842 = shalt.err (!%p1839_p1)
}
0x1164   :  { %s1863_s14 = smov 128   ;;  %s1864_s15 = smov 8  }
0x1165   :  { %1479 = dma.vmem_to_hbm [thread:$0]  %s1474_s25, 256, %s2231_s11, [#allocation4], %s1863_s14, %s1863_s14, %s1864_s15  }
0x1166   :  { %1845 = dma.done.wait [#allocation4], 256  }
0x1167   :  { %1846 = vsyncadd [#allocation4], 4294967040 }
0x1168   :  { %1483 = vsyncpa [#allocation3], 1 }
0x1169   :  { %1484 = vsyncpa [#allocation4], 1 }

</bundles_post_ra>
